<compile_context>
chip_gen: v7x
topology: tpu7x:2x2x1
jax: 0.10.0
libtpu: 0.0.40
codegen_flags: <defaults>
</compile_context>

<pallas_src>
import jax
import jax.numpy as jnp
from jax import lax
from jax.experimental import pallas as pl
from jax.experimental.pallas import tpu as pltpu


def s5_kernel(x_ref, adT_ref, ad2T_ref, bdT_ref, cT_ref, dT_ref, gamma_ref,
              beta_ref, o_ref, h_carry, h_hist, v_buf):
    """One (batch_tile, seq_chunk) tile of the S5 recurrence.

    x_ref:     (rows, D)  rows = seq_chunk * batch_tile, time-major in the tile
    adT_ref:   (N, N)     A_d.T          (pre-transposed in the wrapper)
    ad2T_ref:  (N, N)     (A_d @ A_d).T  (precomputed, HIGHEST precision)
    bdT_ref:   (D, N)     B_d.T
    cT_ref:    (N, D)     C.T
    dT_ref:    (D, D)     D.T
    gamma_ref: (1, D)     LayerNorm weight
    beta_ref:  (1, D)     LayerNorm bias
    o_ref:     (rows, D)  output tile
    h_carry:   (Bt, N)    state carried across seq chunks (VMEM scratch)
    h_hist:    (rows, N)  chunk scratch: holds U first, then all h_t
    v_buf:     (rows, N)  chunk scratch: V = U @ A_d.T
    """
    rows, D = x_ref.shape
    bt, N = h_carry.shape
    tc = rows // bt

    # Reset the carried state at the first seq chunk of every batch tile.
    @pl.when(pl.program_id(1) == 0)
    def _():
        h_carry[...] = jnp.zeros_like(h_carry)

    x2 = x_ref[...]                      # (rows, D)
    adT = adT_ref[...]                   # (N, N)
    ad2T = ad2T_ref[...]                 # (N, N)

    # Hoisted input projection for the whole chunk:  U = X @ B_d.T -> (rows, N)
    u = jnp.dot(x2, bdT_ref[...], preferred_element_type=jnp.float32)
    h_hist[...] = u
    if tc >= 2:
        # V[t] = u_t @ A_d.T for the whole chunk (feeds the pair-blocked scan).
        v_buf[...] = jnp.dot(u, adT, preferred_element_type=jnp.float32)

    # Sequential recurrence, pair-blocked: the critical dependent-MXU chain is
    # tc//2 long instead of tc.  Static Python unroll (tc is bounded by the
    # wrapper) gives the scheduler full visibility; all slices are static.
    h = h_carry[...]
    for j in range(tc // 2):
        lo0 = (2 * j) * bt
        lo1 = lo0 + bt
        u0 = h_hist[lo0:lo0 + bt, :]          # u_{2j}
        u1 = h_hist[lo1:lo1 + bt, :]          # u_{2j+1}
        v0 = v_buf[lo0:lo0 + bt, :]           # u_{2j} @ A_d.T
        h0 = jnp.dot(h, adT, preferred_element_type=jnp.float32) + u0
        h1 = jnp.dot(h, ad2T, preferred_element_type=jnp.float32) + v0 + u1
        h_hist[lo0:lo0 + bt, :] = h0          # h_{2j}
        h_hist[lo1:lo1 + bt, :] = h1          # h_{2j+1}
        h = h1
    if tc % 2:                                # trailing odd step
        lo = (tc - 1) * bt
        h = (jnp.dot(h, adT, preferred_element_type=jnp.float32)
             + h_hist[lo:lo + bt, :])
        h_hist[lo:lo + bt, :] = h
    h_carry[...] = h

    # Bulk output projection, residual and LayerNorm over the whole chunk:
    #   Y = H @ C.T + X @ D.T ;  out = LN(Y + X) * gamma + beta
    y = (jnp.dot(h_hist[...], cT_ref[...], preferred_element_type=jnp.float32)
         + jnp.dot(x2, dT_ref[...], preferred_element_type=jnp.float32))
    z = y + x2
    mean = jnp.mean(z, axis=-1, keepdims=True)
    var = jnp.mean((z - mean) * (z - mean), axis=-1, keepdims=True)
    zn = (z - mean) * lax.rsqrt(var + 1e-5)
    o_ref[...] = zn * gamma_ref[...] + beta_ref[...]


def _pick_tiles(B, T, D, N, *, max_unroll=64, vmem_budget=4 << 20):
    """Choose (batch_tile, seq_chunk).

    batch_tile splits the "parallel" grid axis (so v7x's 2 TensorCores each get
    work).  seq_chunk is the largest divisor of T whose per-chunk footprint
    (double-buffered x/out tiles + U/V/state history, f32) stays under a small
    budget (safe w.r.t. v7x's 64 MiB VMEM and all default scoped limits),
    whose row count is sublane-aligned when the seq axis is actually tiled,
    and whose static unroll stays modest.
    """
    batch_tile = B // 2 if (B % 2 == 0 and B >= 2) else B
    seq_chunk = T
    for tc in range(min(T, max_unroll), 0, -1):
        if T % tc:
            continue
        rows = tc * batch_tile
        if T // tc > 1 and rows % 8 != 0:       # (8,128) BlockSpec constraint
            continue
        if 4 * rows * (4 * D + 2 * N) <= vmem_budget:
            seq_chunk = tc
            break
    return batch_tile, seq_chunk


@jax.jit
def s5_forward(x, A_d, B_d, C, Dm, gamma, beta):
    """x: (batch, seq_len, d_model) f32 -> (batch, seq_len, d_model) f32."""
    Bsz, T, D = x.shape
    N = A_d.shape[0]

    batch_tile, seq_chunk = _pick_tiles(Bsz, T, D, N)
    nb = Bsz // batch_tile
    ns = T // seq_chunk
    rows = seq_chunk * batch_tile

    # Time-major, flattened per batch tile: x3[b_tile, t*batch_tile + bt, :]
    x3 = (jnp.transpose(x, (1, 0, 2))               # (T, B, D)
          .reshape(T, nb, batch_tile, D)
          .transpose(1, 0, 2, 3)                    # (nb, T, Bt, D)
          .reshape(nb, T * batch_tile, D))

    # Pre-transposed weights: keeps XLU transposes out of the kernel.
    adT = jnp.transpose(A_d)        # (N, N)
    # (A_d @ A_d).T at HIGHEST precision so the pair-blocked scan matches the
    # step-by-step reference numerics.
    ad2T = jnp.transpose(
        jnp.matmul(A_d, A_d, precision=lax.Precision.HIGHEST))   # (N, N)
    bdT = jnp.transpose(B_d)        # (D, N)
    cT = jnp.transpose(C)           # (N, D)
    dT = jnp.transpose(Dm)          # (D, D)
    gamma2 = gamma.reshape(1, D)
    beta2 = beta.reshape(1, D)

    def wspec(shape):
        return pl.BlockSpec(shape, lambda b, s: (0,) * len(shape))

    xspec = pl.BlockSpec((None, rows, D), lambda b, s: (b, s, 0))

    out3 = pl.pallas_call(
        s5_kernel,
        out_shape=jax.ShapeDtypeStruct((nb, T * batch_tile, D), jnp.float32),
        grid=(nb, ns),
        in_specs=[
            xspec,                # x tile
            wspec((N, N)),        # A_d.T
            wspec((N, N)),        # (A_d @ A_d).T
            wspec((D, N)),        # B_d.T
            wspec((N, D)),        # C.T
            wspec((D, D)),        # D.T
            wspec((1, D)),        # LayerNorm gamma
            wspec((1, D)),        # LayerNorm beta
        ],
        out_specs=xspec,
        scratch_shapes=[
            pltpu.VMEM((batch_tile, N), jnp.float32),   # carried state h
            pltpu.VMEM((rows, N), jnp.float32),         # U / state history
            pltpu.VMEM((rows, N), jnp.float32),         # V = U @ A_d.T
        ],
        compiler_params=pltpu.CompilerParams(
            dimension_semantics=("parallel", "arbitrary")),
    )(x3, adT, ad2T, bdT, cT, dT, gamma2, beta2)

    # (nb, T*Bt, D) -> (B, T, D)
    out = (out3.reshape(nb, T, batch_tile, D)
           .transpose(1, 0, 2, 3)
           .reshape(T, Bsz, D)
           .transpose(1, 0, 2))
    return out


def make_params(key, d_model, d_state, dt_min=0.001, dt_max=0.1):
    """Deterministic synthetic parameters mirroring S5Layer.__init__."""
    kA, kB, kC, kD, kdt = jax.random.split(key, 5)
    A = jax.random.normal(kA, (d_state, d_state), jnp.float32)
    B = jax.random.normal(kB, (d_state, d_model), jnp.float32)
    C = jax.random.normal(kC, (d_model, d_state), jnp.float32)
    Dm = jax.random.normal(kD, (d_model, d_model), jnp.float32)
    log_dt = (jax.random.uniform(kdt, (1,), jnp.float32)
              * (jnp.log(dt_max) - jnp.log(dt_min)) + jnp.log(dt_min))
    gamma = jnp.ones((d_model,), jnp.float32)   # nn.LayerNorm weight
    beta = jnp.zeros((d_model,), jnp.float32)   # nn.LayerNorm bias
    return A, B, C, Dm, log_dt, gamma, beta


def discretize(A, B, log_dt):
    """dt = exp(log_dt); A_d = expm(A*dt); B_d = A^{-1}(A_d - I)B (plain JAX)."""
    dt = jnp.exp(log_dt)[0]
    A_d = jax.scipy.linalg.expm(A * dt)
    eye = jnp.eye(A.shape[0], dtype=A.dtype)
    B_d = jnp.linalg.solve(A, (A_d - eye) @ B)
    return A_d.astype(jnp.float32), B_d.astype(jnp.float32)


def s5_reference(x, A_d, B_d, C, Dm, gamma, beta):
    """Pure-JAX reference for correctness checking."""
    Bsz, T, D = x.shape
    N = A_d.shape[0]
    h = jnp.zeros((Bsz, N), jnp.float32)
    ys = []
    for t in range(T):
        xt = x[:, t]
        h = h @ A_d.T + xt @ B_d.T
        ys.append(h @ C.T + xt @ Dm.T)
    y = jnp.stack(ys, axis=1)
    z = y + x
    mean = jnp.mean(z, axis=-1, keepdims=True)
    var = jnp.mean((z - mean) ** 2, axis=-1, keepdims=True)
    return (z - mean) / jnp.sqrt(var + 1e-5) * gamma + beta


if __name__ == "__main__":
    d_model = 32
    d_state = 64
    batch = 2
    seq_len = 8

    key = jax.random.PRNGKey(0)
    kx, kp = jax.random.split(key)

    x = jax.random.normal(kx, (batch, seq_len, d_model), jnp.float32)
    A, B, C, Dm, log_dt, gamma, beta = make_params(kp, d_model, d_state)
    A_d, B_d = discretize(A, B, log_dt)

    out = s5_forward(x, A_d, B_d, C, Dm, gamma, beta)
    out = jax.block_until_ready(out)

    ref = s5_reference(x, A_d, B_d, C, Dm, gamma, beta)
    assert out.shape == (batch, seq_len, d_model)
    assert jnp.allclose(out, ref, rtol=1e-3, atol=1e-3), "mismatch vs reference"

    print("KERNEL_OK")
</pallas_src>

<mosaic_0001>
module attributes {stable_mosaic.version = 11 : i64} {
  func.func @s5_kernel(%arg0: i32, %arg1: i32, %arg2: memref<1x8x32xf32, #tpu.memory_space<vmem>>, %arg3: memref<64x64xf32, #tpu.memory_space<vmem>>, %arg4: memref<64x64xf32, #tpu.memory_space<vmem>>, %arg5: memref<32x64xf32, #tpu.memory_space<vmem>>, %arg6: memref<64x32xf32, #tpu.memory_space<vmem>>, %arg7: memref<32x32xf32, #tpu.memory_space<vmem>>, %arg8: memref<1x32xf32, #tpu.memory_space<vmem>>, %arg9: memref<1x32xf32, #tpu.memory_space<vmem>>, %arg10: memref<1x8x32xf32, #tpu.memory_space<vmem>>, %arg11: memref<1x64xf32, #tpu.memory_space<vmem>>, %arg12: memref<8x64xf32, #tpu.memory_space<vmem>>, %arg13: memref<8x64xf32, #tpu.memory_space<vmem>>) attributes {dimension_semantics = [#tpu.dimension_semantics<parallel>, #tpu.dimension_semantics<arbitrary>], iteration_bounds = array<i64: 2, 1>, scalar_prefetch = 0 : i64, scratch_operands = 3 : i64, tpu.core_type = #tpu.core_type<tc>, window_params = [{transform_indices = @transform_0, window_bounds = array<i64: 1, 8, 32>}, {pipeline_mode = #tpu.pipeline_mode<synchronous>, transform_indices = @transform_1, window_bounds = array<i64: 64, 64>}, {pipeline_mode = #tpu.pipeline_mode<synchronous>, transform_indices = @transform_2, window_bounds = array<i64: 64, 64>}, {pipeline_mode = #tpu.pipeline_mode<synchronous>, transform_indices = @transform_3, window_bounds = array<i64: 32, 64>}, {pipeline_mode = #tpu.pipeline_mode<synchronous>, transform_indices = @transform_4, window_bounds = array<i64: 64, 32>}, {pipeline_mode = #tpu.pipeline_mode<synchronous>, transform_indices = @transform_5, window_bounds = array<i64: 32, 32>}, {pipeline_mode = #tpu.pipeline_mode<synchronous>, transform_indices = @transform_6, window_bounds = array<i64: 1, 32>}, {pipeline_mode = #tpu.pipeline_mode<synchronous>, transform_indices = @transform_7, window_bounds = array<i64: 1, 32>}, {transform_indices = @transform_8, window_bounds = array<i64: 1, 8, 32>}]} {
    %c0_i32 = arith.constant 0 : i32
    %0 = arith.cmpi eq, %arg1, %c0_i32 : i32
    %1 = arith.extui %0 : i1 to i32
    %c0_i32_0 = arith.constant 0 : i32
    %2 = arith.cmpi ne, %1, %c0_i32_0 : i32
    scf.if %2 {
      %cst_79 = arith.constant 0.000000e+00 : f32
      %90 = vector.broadcast %cst_79 : f32 to vector<1x64xf32>
      %c0_80 = arith.constant 0 : index
      %c0_81 = arith.constant 0 : index
      %91 = vector.load %arg11[%c0_80, %c0_81] : memref<1x64xf32, #tpu.memory_space<vmem>>, vector<1x64xf32>
      tpu.vector_store %arg11[%c0_80, %c0_81], %90 {strides = array<i32>} : memref<1x64xf32, #tpu.memory_space<vmem>>, vector<1x64xf32>,
    } else {
    }
    %c0 = arith.constant 0 : index
    %c0_1 = arith.constant 0 : index
    %c0_2 = arith.constant 0 : index
    %3 = vector.load %arg2[%c0, %c0_1, %c0_2] : memref<1x8x32xf32, #tpu.memory_space<vmem>>, vector<1x8x32xf32>
    %4 = vector.shape_cast %3 : vector<1x8x32xf32> to vector<8x32xf32>
    %c0_3 = arith.constant 0 : index
    %c0_4 = arith.constant 0 : index
    %5 = vector.load %arg3[%c0_3, %c0_4] : memref<64x64xf32, #tpu.memory_space<vmem>>, vector<64x64xf32>
    %c0_5 = arith.constant 0 : index
    %c0_6 = arith.constant 0 : index
    %6 = vector.load %arg4[%c0_5, %c0_6] : memref<64x64xf32, #tpu.memory_space<vmem>>, vector<64x64xf32>
    %c0_7 = arith.constant 0 : index
    %c0_8 = arith.constant 0 : index
    %7 = vector.load %arg5[%c0_7, %c0_8] : memref<32x64xf32, #tpu.memory_space<vmem>>, vector<32x64xf32>
    %cst = arith.constant dense<0.000000e+00> : vector<8x64xf32>
    %8 = tpu.matmul %4, %7, %cst {dimension_numbers = #tpu.dot_dimension_numbers<[1], [0], [0], [1], [0, 0, 1, 1], [], []>} : vector<8x32xf32>, vector<32x64xf32>, vector<8x64xf32> -> vector<8x64xf32>
    %c0_9 = arith.constant 0 : index
    %c0_10 = arith.constant 0 : index
    %9 = vector.load %arg12[%c0_9, %c0_10] : memref<8x64xf32, #tpu.memory_space<vmem>>, vector<8x64xf32>
    tpu.vector_store %arg12[%c0_9, %c0_10], %8 {strides = array<i32>} : memref<8x64xf32, #tpu.memory_space<vmem>>, vector<8x64xf32>,
    %cst_11 = arith.constant dense<0.000000e+00> : vector<8x64xf32>
    %10 = tpu.matmul %8, %5, %cst_11 {dimension_numbers = #tpu.dot_dimension_numbers<[1], [0], [0], [1], [0, 0, 1, 1], [], []>} : vector<8x64xf32>, vector<64x64xf32>, vector<8x64xf32> -> vector<8x64xf32>
    %c0_12 = arith.constant 0 : index
    %c0_13 = arith.constant 0 : index
    %11 = vector.load %arg13[%c0_12, %c0_13] : memref<8x64xf32, #tpu.memory_space<vmem>>, vector<8x64xf32>
    tpu.vector_store %arg13[%c0_12, %c0_13], %10 {strides = array<i32>} : memref<8x64xf32, #tpu.memory_space<vmem>>, vector<8x64xf32>,
    %c0_14 = arith.constant 0 : index
    %c0_15 = arith.constant 0 : index
    %12 = vector.load %arg11[%c0_14, %c0_15] : memref<1x64xf32, #tpu.memory_space<vmem>>, vector<1x64xf32>
    %c0_16 = arith.constant 0 : index
    %c0_17 = arith.constant 0 : index
    %13 = vector.load %arg12[%c0_16, %c0_17] : memref<8x64xf32, #tpu.memory_space<vmem>>, vector<1x64xf32>
    %c1 = arith.constant 1 : index
    %c0_18 = arith.constant 0 : index
    %14 = vector.load %arg12[%c1, %c0_18] : memref<8x64xf32, #tpu.memory_space<vmem>>, vector<1x64xf32>
    %c0_19 = arith.constant 0 : index
    %c0_20 = arith.constant 0 : index
    %15 = vector.load %arg13[%c0_19, %c0_20] : memref<8x64xf32, #tpu.memory_space<vmem>>, vector<1x64xf32>
    %cst_21 = arith.constant dense<0.000000e+00> : vector<1x64xf32>
    %16 = tpu.matmul %12, %5, %cst_21 {dimension_numbers = #tpu.dot_dimension_numbers<[1], [0], [0], [1], [0, 0, 1, 1], [], []>} : vector<1x64xf32>, vector<64x64xf32>, vector<1x64xf32> -> vector<1x64xf32>
    %17 = arith.addf %16, %13 : vector<1x64xf32>
    %cst_22 = arith.constant dense<0.000000e+00> : vector<1x64xf32>
    %18 = tpu.matmul %12, %6, %cst_22 {dimension_numbers = #tpu.dot_dimension_numbers<[1], [0], [0], [1], [0, 0, 1, 1], [], []>} : vector<1x64xf32>, vector<64x64xf32>, vector<1x64xf32> -> vector<1x64xf32>
    %19 = arith.addf %18, %15 : vector<1x64xf32>
    %20 = arith.addf %19, %14 : vector<1x64xf32>
    %c0_23 = arith.constant 0 : index
    %c0_24 = arith.constant 0 : index
    %21 = vector.load %arg12[%c0_23, %c0_24] : memref<8x64xf32, #tpu.memory_space<vmem>>, vector<1x64xf32>
    tpu.vector_store %arg12[%c0_23, %c0_24], %17 {strides = array<i32>} : memref<8x64xf32, #tpu.memory_space<vmem>>, vector<1x64xf32>,
    %c1_25 = arith.constant 1 : index
    %c0_26 = arith.constant 0 : index
    %22 = vector.load %arg12[%c1_25, %c0_26] : memref<8x64xf32, #tpu.memory_space<vmem>>, vector<1x64xf32>
    tpu.vector_store %arg12[%c1_25, %c0_26], %20 {strides = array<i32>} : memref<8x64xf32, #tpu.memory_space<vmem>>, vector<1x64xf32>,
    %c2 = arith.constant 2 : index
    %c0_27 = arith.constant 0 : index
    %23 = vector.load %arg12[%c2, %c0_27] : memref<8x64xf32, #tpu.memory_space<vmem>>, vector<1x64xf32>
    %c3 = arith.constant 3 : index
    %c0_28 = arith.constant 0 : index
    %24 = vector.load %arg12[%c3, %c0_28] : memref<8x64xf32, #tpu.memory_space<vmem>>, vector<1x64xf32>
    %c2_29 = arith.constant 2 : index
    %c0_30 = arith.constant 0 : index
    %25 = vector.load %arg13[%c2_29, %c0_30] : memref<8x64xf32, #tpu.memory_space<vmem>>, vector<1x64xf32>
    %cst_31 = arith.constant dense<0.000000e+00> : vector<1x64xf32>
    %26 = tpu.matmul %20, %5, %cst_31 {dimension_numbers = #tpu.dot_dimension_numbers<[1], [0], [0], [1], [0, 0, 1, 1], [], []>} : vector<1x64xf32>, vector<64x64xf32>, vector<1x64xf32> -> vector<1x64xf32>
    %27 = arith.addf %26, %23 : vector<1x64xf32>
    %cst_32 = arith.constant dense<0.000000e+00> : vector<1x64xf32>
    %28 = tpu.matmul %20, %6, %cst_32 {dimension_numbers = #tpu.dot_dimension_numbers<[1], [0], [0], [1], [0, 0, 1, 1], [], []>} : vector<1x64xf32>, vector<64x64xf32>, vector<1x64xf32> -> vector<1x64xf32>
    %29 = arith.addf %28, %25 : vector<1x64xf32>
    %30 = arith.addf %29, %24 : vector<1x64xf32>
    %c2_33 = arith.constant 2 : index
    %c0_34 = arith.constant 0 : index
    %31 = vector.load %arg12[%c2_33, %c0_34] : memref<8x64xf32, #tpu.memory_space<vmem>>, vector<1x64xf32>
    tpu.vector_store %arg12[%c2_33, %c0_34], %27 {strides = array<i32>} : memref<8x64xf32, #tpu.memory_space<vmem>>, vector<1x64xf32>,
    %c3_35 = arith.constant 3 : index
    %c0_36 = arith.constant 0 : index
    %32 = vector.load %arg12[%c3_35, %c0_36] : memref<8x64xf32, #tpu.memory_space<vmem>>, vector<1x64xf32>
    tpu.vector_store %arg12[%c3_35, %c0_36], %30 {strides = array<i32>} : memref<8x64xf32, #tpu.memory_space<vmem>>, vector<1x64xf32>,
    %c4 = arith.constant 4 : index
    %c0_37 = arith.constant 0 : index
    %33 = vector.load %arg12[%c4, %c0_37] : memref<8x64xf32, #tpu.memory_space<vmem>>, vector<1x64xf32>
    %c5 = arith.constant 5 : index
    %c0_38 = arith.constant 0 : index
    %34 = vector.load %arg12[%c5, %c0_38] : memref<8x64xf32, #tpu.memory_space<vmem>>, vector<1x64xf32>
    %c4_39 = arith.constant 4 : index
    %c0_40 = arith.constant 0 : index
    %35 = vector.load %arg13[%c4_39, %c0_40] : memref<8x64xf32, #tpu.memory_space<vmem>>, vector<1x64xf32>
    %cst_41 = arith.constant dense<0.000000e+00> : vector<1x64xf32>
    %36 = tpu.matmul %30, %5, %cst_41 {dimension_numbers = #tpu.dot_dimension_numbers<[1], [0], [0], [1], [0, 0, 1, 1], [], []>} : vector<1x64xf32>, vector<64x64xf32>, vector<1x64xf32> -> vector<1x64xf32>
    %37 = arith.addf %36, %33 : vector<1x64xf32>
    %cst_42 = arith.constant dense<0.000000e+00> : vector<1x64xf32>
    %38 = tpu.matmul %30, %6, %cst_42 {dimension_numbers = #tpu.dot_dimension_numbers<[1], [0], [0], [1], [0, 0, 1, 1], [], []>} : vector<1x64xf32>, vector<64x64xf32>, vector<1x64xf32> -> vector<1x64xf32>
    %39 = arith.addf %38, %35 : vector<1x64xf32>
    %40 = arith.addf %39, %34 : vector<1x64xf32>
    %c4_43 = arith.constant 4 : index
    %c0_44 = arith.constant 0 : index
    %41 = vector.load %arg12[%c4_43, %c0_44] : memref<8x64xf32, #tpu.memory_space<vmem>>, vector<1x64xf32>
    tpu.vector_store %arg12[%c4_43, %c0_44], %37 {strides = array<i32>} : memref<8x64xf32, #tpu.memory_space<vmem>>, vector<1x64xf32>,
    %c5_45 = arith.constant 5 : index
    %c0_46 = arith.constant 0 : index
    %42 = vector.load %arg12[%c5_45, %c0_46] : memref<8x64xf32, #tpu.memory_space<vmem>>, vector<1x64xf32>
    tpu.vector_store %arg12[%c5_45, %c0_46], %40 {strides = array<i32>} : memref<8x64xf32, #tpu.memory_space<vmem>>, vector<1x64xf32>,
    %c6 = arith.constant 6 : index
    %c0_47 = arith.constant 0 : index
    %43 = vector.load %arg12[%c6, %c0_47] : memref<8x64xf32, #tpu.memory_space<vmem>>, vector<1x64xf32>
    %c7 = arith.constant 7 : index
    %c0_48 = arith.constant 0 : index
    %44 = vector.load %arg12[%c7, %c0_48] : memref<8x64xf32, #tpu.memory_space<vmem>>, vector<1x64xf32>
    %c6_49 = arith.constant 6 : index
    %c0_50 = arith.constant 0 : index
    %45 = vector.load %arg13[%c6_49, %c0_50] : memref<8x64xf32, #tpu.memory_space<vmem>>, vector<1x64xf32>
    %cst_51 = arith.constant dense<0.000000e+00> : vector<1x64xf32>
    %46 = tpu.matmul %40, %5, %cst_51 {dimension_numbers = #tpu.dot_dimension_numbers<[1], [0], [0], [1], [0, 0, 1, 1], [], []>} : vector<1x64xf32>, vector<64x64xf32>, vector<1x64xf32> -> vector<1x64xf32>
    %47 = arith.addf %46, %43 : vector<1x64xf32>
    %cst_52 = arith.constant dense<0.000000e+00> : vector<1x64xf32>
    %48 = tpu.matmul %40, %6, %cst_52 {dimension_numbers = #tpu.dot_dimension_numbers<[1], [0], [0], [1], [0, 0, 1, 1], [], []>} : vector<1x64xf32>, vector<64x64xf32>, vector<1x64xf32> -> vector<1x64xf32>
    %49 = arith.addf %48, %45 : vector<1x64xf32>
    %50 = arith.addf %49, %44 : vector<1x64xf32>
    %c6_53 = arith.constant 6 : index
    %c0_54 = arith.constant 0 : index
    %51 = vector.load %arg12[%c6_53, %c0_54] : memref<8x64xf32, #tpu.memory_space<vmem>>, vector<1x64xf32>
    tpu.vector_store %arg12[%c6_53, %c0_54], %47 {strides = array<i32>} : memref<8x64xf32, #tpu.memory_space<vmem>>, vector<1x64xf32>,
    %c7_55 = arith.constant 7 : index
    %c0_56 = arith.constant 0 : index
    %52 = vector.load %arg12[%c7_55, %c0_56] : memref<8x64xf32, #tpu.memory_space<vmem>>, vector<1x64xf32>
    tpu.vector_store %arg12[%c7_55, %c0_56], %50 {strides = array<i32>} : memref<8x64xf32, #tpu.memory_space<vmem>>, vector<1x64xf32>,
    %c0_57 = arith.constant 0 : index
    %c0_58 = arith.constant 0 : index
    %53 = vector.load %arg11[%c0_57, %c0_58] : memref<1x64xf32, #tpu.memory_space<vmem>>, vector<1x64xf32>
    tpu.vector_store %arg11[%c0_57, %c0_58], %50 {strides = array<i32>} : memref<1x64xf32, #tpu.memory_space<vmem>>, vector<1x64xf32>,
    %c0_59 = arith.constant 0 : index
    %c0_60 = arith.constant 0 : index
    %54 = vector.load %arg12[%c0_59, %c0_60] : memref<8x64xf32, #tpu.memory_space<vmem>>, vector<8x64xf32>
    %c0_61 = arith.constant 0 : index
    %c0_62 = arith.constant 0 : index
    %55 = vector.load %arg6[%c0_61, %c0_62] : memref<64x32xf32, #tpu.memory_space<vmem>>, vector<64x32xf32>
    %cst_63 = arith.constant dense<0.000000e+00> : vector<8x32xf32>
    %56 = tpu.matmul %54, %55, %cst_63 {dimension_numbers = #tpu.dot_dimension_numbers<[1], [0], [0], [1], [0, 0, 1, 1], [], []>} : vector<8x64xf32>, vector<64x32xf32>, vector<8x32xf32> -> vector<8x32xf32>
    %c0_64 = arith.constant 0 : index
    %c0_65 = arith.constant 0 : index
    %57 = vector.load %arg7[%c0_64, %c0_65] : memref<32x32xf32, #tpu.memory_space<vmem>>, vector<32x32xf32>
    %cst_66 = arith.constant dense<0.000000e+00> : vector<8x32xf32>
    %58 = tpu.matmul %4, %57, %cst_66 {dimension_numbers = #tpu.dot_dimension_numbers<[1], [0], [0], [1], [0, 0, 1, 1], [], []>} : vector<8x32xf32>, vector<32x32xf32>, vector<8x32xf32> -> vector<8x32xf32>
    %59 = arith.addf %56, %58 : vector<8x32xf32>
    %60 = arith.addf %59, %4 : vector<8x32xf32>
    %cst_67 = arith.constant dense<0.000000e+00> : vector<8xf32>
    %61 = vector.multi_reduction <add>, %60, %cst_67 [1] : vector<8x32xf32> to vector<8xf32>
    %62 = vector.shape_cast %61 : vector<8xf32> to vector<8x1xf32>
    %cst_68 = arith.constant 3.200000e+01 : f32
    %63 = vector.broadcast %cst_68 : f32 to vector<8x1xf32>
    %64 = arith.divf %62, %63 : vector<8x1xf32>
    %65 = vector.broadcast %64 : vector<8x1xf32> to vector<8x32xf32>
    %66 = arith.subf %60, %65 : vector<8x32xf32>
    %67 = vector.broadcast %64 : vector<8x1xf32> to vector<8x32xf32>
    %68 = arith.subf %60, %67 : vector<8x32xf32>
    %69 = arith.mulf %66, %68 : vector<8x32xf32>
    %cst_69 = arith.constant dense<0.000000e+00> : vector<8xf32>
    %70 = vector.multi_reduction <add>, %69, %cst_69 [1] : vector<8x32xf32> to vector<8xf32>
    %71 = vector.shape_cast %70 : vector<8xf32> to vector<8x1xf32>
    %cst_70 = arith.constant 3.200000e+01 : f32
    %72 = vector.broadcast %cst_70 : f32 to vector<8x1xf32>
    %73 = arith.divf %71, %72 : vector<8x1xf32>
    %74 = vector.broadcast %64 : vector<8x1xf32> to vector<8x32xf32>
    %75 = arith.subf %60, %74 : vector<8x32xf32>
    %cst_71 = arith.constant 9.99999974E-6 : f32
    %76 = vector.broadcast %cst_71 : f32 to vector<8x1xf32>
    %77 = arith.addf %73, %76 : vector<8x1xf32>
    %78 = math.rsqrt %77 : vector<8x1xf32>
    %79 = vector.broadcast %78 : vector<8x1xf32> to vector<8x32xf32>
    %80 = arith.mulf %75, %79 : vector<8x32xf32>
    %c0_72 = arith.constant 0 : index
    %c0_73 = arith.constant 0 : index
    %81 = vector.load %arg8[%c0_72, %c0_73] : memref<1x32xf32, #tpu.memory_space<vmem>>, vector<1x32xf32>
    %82 = vector.broadcast %81 : vector<1x32xf32> to vector<8x32xf32>
    %83 = arith.mulf %80, %82 : vector<8x32xf32>
    %c0_74 = arith.constant 0 : index
    %c0_75 = arith.constant 0 : index
    %84 = vector.load %arg9[%c0_74, %c0_75] : memref<1x32xf32, #tpu.memory_space<vmem>>, vector<1x32xf32>
    %85 = vector.broadcast %84 : vector<1x32xf32> to vector<8x32xf32>
    %86 = arith.addf %83, %85 : vector<8x32xf32>
    %c0_76 = arith.constant 0 : index
    %c0_77 = arith.constant 0 : index
    %c0_78 = arith.constant 0 : index
    %87 = vector.load %arg10[%c0_76, %c0_77, %c0_78] : memref<1x8x32xf32, #tpu.memory_space<vmem>>, vector<1x8x32xf32>
    %88 = vector.shape_cast %87 : vector<1x8x32xf32> to vector<8x32xf32>
    %89 = vector.shape_cast %86 : vector<8x32xf32> to vector<1x8x32xf32>
    tpu.vector_store %arg10[%c0_76, %c0_77, %c0_78], %89 {strides = array<i32>} : memref<1x8x32xf32, #tpu.memory_space<vmem>>, vector<1x8x32xf32>,
    return
  }
  func.func @transform_0(%arg0: i32, %arg1: i32) -> (i32, i32, i32) {
    %c0_i32 = arith.constant 0 : i32
    %c0_i32_0 = arith.constant 0 : i32
    return %arg0, %arg1, %c0_i32 : i32, i32, i32
  }
  func.func @transform_1(%arg0: i32, %arg1: i32) -> (i32, i32) {
    %c0_i32 = arith.constant 0 : i32
    %c0_i32_0 = arith.constant 0 : i32
    %c0_i32_1 = arith.constant 0 : i32
    return %c0_i32, %c0_i32_0 : i32, i32
  }
  func.func @transform_2(%arg0: i32, %arg1: i32) -> (i32, i32) {
    %c0_i32 = arith.constant 0 : i32
    %c0_i32_0 = arith.constant 0 : i32
    %c0_i32_1 = arith.constant 0 : i32
    return %c0_i32, %c0_i32_0 : i32, i32
  }
  func.func @transform_3(%arg0: i32, %arg1: i32) -> (i32, i32) {
    %c0_i32 = arith.constant 0 : i32
    %c0_i32_0 = arith.constant 0 : i32
    %c0_i32_1 = arith.constant 0 : i32
    return %c0_i32, %c0_i32_0 : i32, i32
  }
  func.func @transform_4(%arg0: i32, %arg1: i32) -> (i32, i32) {
    %c0_i32 = arith.constant 0 : i32
    %c0_i32_0 = arith.constant 0 : i32
    %c0_i32_1 = arith.constant 0 : i32
    return %c0_i32, %c0_i32_0 : i32, i32
  }
  func.func @transform_5(%arg0: i32, %arg1: i32) -> (i32, i32) {
    %c0_i32 = arith.constant 0 : i32
    %c0_i32_0 = arith.constant 0 : i32
    %c0_i32_1 = arith.constant 0 : i32
    return %c0_i32, %c0_i32_0 : i32, i32
  }
  func.func @transform_6(%arg0: i32, %arg1: i32) -> (i32, i32) {
    %c0_i32 = arith.constant 0 : i32
    %c0_i32_0 = arith.constant 0 : i32
    %c0_i32_1 = arith.constant 0 : i32
    return %c0_i32, %c0_i32_0 : i32, i32
  }
  func.func @transform_7(%arg0: i32, %arg1: i32) -> (i32, i32) {
    %c0_i32 = arith.constant 0 : i32
    %c0_i32_0 = arith.constant 0 : i32
    %c0_i32_1 = arith.constant 0 : i32
    return %c0_i32, %c0_i32_0 : i32, i32
  }
  func.func @transform_8(%arg0: i32, %arg1: i32) -> (i32, i32, i32) {
    %c0_i32 = arith.constant 0 : i32
    %c0_i32_0 = arith.constant 0 : i32
    return %arg0, %arg1, %c0_i32 : i32, i32, i32
  }
}

</mosaic_0001>

<bundles_post_ra>
// kernel: s5_forward.1
= control target key start
LH: loop header
LB: loop body
LE: loop exit
PB: predicated region body
PF: predicated region fallthrough
CT: control target
= control target key end

     0   :  { %13 = vsyncpa [#allocation6], 0  ;;  %s2401_s0 = inlined_call_operand.vmem [shape: f32[2,8,32], index: 0, kind: input, shape index: {}]   ;;  %s2402_s1 = inlined_call_operand.vmem [shape: f32[64,64], index: 1, kind: input, shape index: {}]   ;;  %s2403_s2 = inlined_call_operand.vmem [shape: f32[64,64], index: 2, kind: input, shape index: {}]   ;;  %s2404_s3 = inlined_call_operand.vmem [shape: f32[32,64], index: 3, kind: input, shape index: {}]   ;;  %s2405_s4 = inlined_call_operand.vmem [shape: f32[64,32], index: 4, kind: input, shape index: {}]   ;;  %s2406_s5 = inlined_call_operand.vmem [shape: f32[32,32], index: 5, kind: input, shape index: {}]   ;;  %s2407_s6 = inlined_call_operand.vmem [shape: f32[1,32], index: 6, kind: input, shape index: {}]   ;;  %s2408_s7 = inlined_call_operand.vmem [shape: f32[1,32], index: 7, kind: input, shape index: {}]   ;;  %s2409_s8 = inlined_call_operand.hbm [shape: f32[2,8,32], index: 8, kind: output, shape index: {}]  }
   0x1   :  { %15 = vsyncpa [#allocation6 + $0x1], 0  ;;  %s2034_s27 = smov 0   ;;  %s2036_s28 = smov 0  }
   0x2   :  { %s2038_s29 = smov 0   ;;  %s2040_s30 = smov 0  }
   0x3   :  { %s2042_s9 = smov 0   ;;  %s2044_s10 = smov 0  }
   0x4 LB: > { %s1376_s11 = sadd.s32 4294967295, %s1983_s10   ;;  %s1377_s12 = sadd.s32 4294967294, %s1983_s10   ;;  %s1983_s10 = sphi %s2044_s10, %s21_s10   ;;  %s1979_s9 = sphi %s2042_s9, %s2416_s9   ;;  %s1975_s30 = sphi %s2040_s30, %s2415_s30   ;;  %s1971_s29 = sphi %s2038_s29, %s2414_s29   ;;  %s1967_s28 = sphi %s2036_s28, %s2413_s28   ;;  %s1963_s27 = sphi %s2034_s27, %s2412_s27  }
   0x5   : > { %s33_s13 = sadd.s32 1, %s1979_s9  ;;  %s217_s14 = sadd.s32 1, %s1971_s29 }
   0x6   : > { %p35_p0 = scmp.ge.s32.totalorder %s33_s13, 2  ;;  %p227_p1 = scmp.ne.s32.totalorder %s1971_s29, %s1967_s28 }
   0x7   : > { %p228_p2 = scmp.eq.s32.totalorder %s1376_s11, 1  ;;  %p233_p3 = scmp.ne.s32.totalorder %s1967_s28, %s1963_s27 }
   0x8   : > { %s2418_s13 = smov (%p35_p0, %s33_s13), 0  ;;  %p234_p5 = scmp.eq.s32.totalorder %s1377_s12, 1 }
   0x9   : > { %p2074_p4 = por %p228_p2, %p227_p1  ;;  %s212_s16 = ssub.s32 %s1979_s9, %s2418_s13 }
   0xa   : > { %p1380_p6 = scmp.ge.s32.totalorder %s1983_s10, 1  ;;  %p215_p7 = scmp.eq.s32.totalorder %s212_s16, 0 }
   0xb   : > { %p2081_p8 = por %p234_p5, %p233_p3  ;;  %p283_p9 = scmp.lt.s32.totalorder %s1983_s10, 3 }
   0xc   : > { %s2087_s18 = scalar_select %p215_p7, %s1971_s29, %s217_s14  }
   0xd   : > { %p284_p10 = pnand %p1380_p6, %p283_p9 }
   0xe   : > { %v349_v0 = vld [vmem:[%s2404_s3] sm:$0xff] (!%p284_p10)  ;;  %v350_v1 = vld [vmem:[%s2404_s3 + $0x8] sm:$0xff] (!%p284_p10)  ;;  %v1985_v3 = vmov (!%p284_p10), 0.0|0.0   ;;  %v351_v6 = vld [vmem:[%s2404_s3 + $0x10] sm:$0xff] (!%p284_p10)  ;;  %p319_p11 = scmp.lt.s32.totalorder (!%p284_p10), %s1975_s30, 1  ;;  %vm330_vm0 = vcmask (!%p284_p10), 516096  }
   0xf   : > { %287 = sbr.rel (%p284_p10) target bundleno = 1670 (0x686), region = 52  ;;  %v333_v2 = vld [vmem:[%s2402_s1] sm:$0xff] (!%p284_p10)  ;;  %1713 = vmatprep.subr.bf16.mxu1 (!%p284_p10), %v1985_v3  ;;  %1731 = vmatprep.subr.bf16.mxu0 (!%p284_p10), %v1985_v3  ;;  %v1714_v4 = vpack.c.bf16 (!%p284_p10), %v350_v1, %v349_v0  ;;  %v334_v5 = vld [vmem:[%s2402_s1 + $0x8] sm:$0xff] (!%p284_p10)  ;;  %v352_v7 = vld [vmem:[%s2404_s3 + $0x18] sm:$0xff] (!%p284_p10)  ;;  %vm1986_vm1 = vmmov (!%p284_p10), 0   ;;  %v1987_v11 = vmov (!%p284_p10), 0.0  }
  0x10   : > { %v2110_v8 = vpack.c.bf16 (!%p284_p10), %v334_v5, %v333_v2  ;;  %v335_v9 = vld [vmem:[%s2402_s1 + $0x10] sm:$0xff] (!%p284_p10)  ;;  %v336_v10 = vld [vmem:[%s2402_s1 + $0x18] sm:$0xff] (!%p284_p10)  ;;  %1509 = vmatprep.mubr.msk.f32.mxu1 (!%p284_p10), %vm1986_vm1, %v1987_v11  ;;  %1547 = vmatprep.mubr.msk.f32.mxu0 (!%p284_p10), %vm1986_vm1, %v1987_v11  ;;  %331 = vst.msk [vmem:[#allocation2] sm:$0x1] (!%p284_p10), %vm330_vm0, %v1987_v11  ;;  %v1717_v12 = vpack.c.bf16 (!%p284_p10), %v352_v7, %v351_v6  ;;  %v337_v14 = vld [vmem:[%s2402_s1 + $0x20] sm:$0xff] (!%p284_p10)  ;;  %vm353_vm2 = vcmask (!%p284_p10), 261120  }
  0x11   : > { %1715 = vmatpush3.bf16.msra.mxu1 (!%p284_p10), %v1714_v4  ;;  %v2127_v13 = vpack.c.bf16 (!%p284_p10), %v336_v10, %v335_v9  ;;  %v338_v15 = vld [vmem:[%s2402_s1 + $0x28] sm:$0xff] (!%p284_p10)  ;;  %v339_v18 = vld [vmem:[%s2402_s1 + $0x30] sm:$0xff] (!%p284_p10)  ;;  %v340_v19 = vld [vmem:[%s2402_s1 + $0x38] sm:$0xff] (!%p284_p10)  ;;  %vm427_vm3 = vcmask (!%p284_p10), 523264   ;;  %s316_s12 = sand.u32 (!%p284_p10), 1, %s1967_s28   ;;  %s1398_s22 = sshll.u32 (!%p284_p10), %s1975_s30, 7 }
  0x12   : > { %1733 = vmatpush3.bf16.msra.mxu0 (!%p284_p10), %v2110_v8  ;;  %1716 = vmatprep.subr.bf16.mxu1 (!%p284_p10), %v1985_v3  ;;  %v2142_v17 = vpack.c.bf16 (!%p284_p10), %v338_v15, %v337_v14  ;;  %v2158_v20 = vpack.c.bf16 (!%p284_p10), %v340_v19, %v339_v18  ;;  %v341_v22 = vld [vmem:[%s2403_s2] sm:$0xff] (!%p284_p10)  ;;  %v342_v23 = vld [vmem:[%s2403_s2 + $0x8] sm:$0xff] (!%p284_p10)  ;;  %v343_v25 = vld [vmem:[%s2403_s2 + $0x10] sm:$0xff] (!%p284_p10)  ;;  %s1381_s14 = sshll.u32 (!%p284_p10), %s316_s12, 3  ;;  %s2353_s11 = scalar_lea.hbm (!%p284_p10), %s2409_s8, %s1398_s22 }
  0x13   : > { %1734 = vmatprep.subr.bf16.mxu0 (!%p284_p10), %v1985_v3  ;;  %v2187_v24 = vpack.c.bf16 (!%p284_p10), %v342_v23, %v341_v22  ;;  %v344_v26 = vld [vmem:[%s2403_s2 + $0x18] sm:$0xff] (!%p284_p10)  ;;  %v345_v30 = vld [vmem:[%s2403_s2 + $0x20] sm:$0xff] (!%p284_p10)  ;;  %v346_v31 = vld [vmem:[%s2403_s2 + $0x28] sm:$0xff] (!%p284_p10)  ;;  %s1291_s16 = scalar_lea.sflag (!%p284_p10), [#allocation6], %s316_s12 }
  0x14   : > { %v2198_v29 = vpack.c.bf16 (!%p284_p10), %v344_v26, %v343_v25  ;;  %v2210_v32 = vpack.c.bf16 (!%p284_p10), %v346_v31, %v345_v30  ;;  %v347_v33 = vld [vmem:[%s2403_s2 + $0x30] sm:$0xff] (!%p284_p10)  ;;  %v348_v34 = vld [vmem:[%s2403_s2 + $0x38] sm:$0xff] (!%p284_p10)  ;;  %v1111_v58 = vld [vmem:[%s2406_s5] sm:$0xff] (!%p284_p10) }
  0x15   : > { %1718 = vmatpush3.bf16.msra.mxu1 (!%p284_p10), %v1717_v12  ;;  %v2220_v38 = vpack.c.bf16 (!%p284_p10), %v348_v34, %v347_v33  ;;  %v1112_v59 = vld [vmem:[%s2406_s5 + $0x8] sm:$0xff] (!%p284_p10)  ;;  %v1114_v9 = vld [vmem:[%s2406_s5 + $0x18] sm:$0xff] (!%p284_p10)  ;;  %v1103_v12 = vld [vmem:[%s2405_s4] sm:$0xff] (!%p284_p10) }
  0x16   : > { %s320_s23 = scalar_select %p319_p11, %s1975_s30, 1  ;;  %1736 = vmatpush3.bf16.msra.mxu0 %v2127_v13  ;;  %1719 = vmatprep.subr.bf16.mxu1 %v1985_v3  ;;  %v1828_v6 = vpack.c.bf16 %v1112_v59, %v1111_v58  ;;  %v1105_v15 = vld [vmem:[%s2405_s4 + $0x10] sm:$0xff]  ;;  %v1107_v19 = vld [vmem:[%s2405_s4 + $0x20] sm:$0xff]  ;;  %v1110_v22 = vld [vmem:[%s2405_s4 + $0x38] sm:$0xff] }
  0x17   : > { %1737 = vmatprep.subr.bf16.mxu0 %v1985_v3  ;;  %v503_v21 = vld [vmem:[#allocation2] sm:$0x1]  ;;  %s1988_s30 = smov [#allocation5]  }
  0x18   : > { %s1382_s24 = sshll.u32 %s320_s23, 3  ;;  %s318_s23 = scalar_lea.vmem [#allocation5], %s1381_s14 }
  0x19   : > { %s325_s19 = scalar_lea.vmem %s2401_s0, %s1382_s24  ;;  %s1305_s24 = sshll.u32 %s318_s23, 4  ;;  %s2355_s24 = int_to_ptr.vmem [resolvable:$true] %s1305_s24 }
  0x1a   : > { %v2139_v16 = vld [vmem:[%s325_s19] sm:$0xff]  ;;  %1739 = vmatpush3.bf16.msra.mxu0 %v2142_v17  ;;  %s1905_s19 = scalar_lea.vmem %s2355_s24, 128  ;;  %s1909_s14 = sshll.u32 %s1988_s30, 4  ;;  %s1910_s14 = int_to_ptr.vmem [resolvable:$false] %s1909_s14 }
  0x1b   : > { %1510 = vmatmul.mubr.msk.f32.vlgmr.msra.gmra.mrb[0].mxu1 %vm353_vm2, %v2139_v16  ;;  %1740 = vmatprep.subr.bf16.mxu0 %v1985_v3  ;;  %p1906_p12 = scmp.ne.s32.totalorder %s2355_s24, %s1905_s19  ;;  %s1911_s20 = scalar_lea.vmem %s1910_s14, 256 }
  0x1c   : > { %1721 = vmatpush3.bf16.msra.mxu1 %v2110_v8  ;;  %1528 = vmatprep.mubr.msk.f32.mxu1 %vm1986_vm1, %v1987_v11  ;;  %p1912_p1 = scmp.lt.s32.totalorder %s2355_s24, %s1910_s14  ;;  %p1913_p2 = scmp.lt.s32.totalorder %s1911_s20, %s1905_s19 }
  0x1d   : > { %1722 = vmatprep.subr.bf16.mxu1 %v1985_v3  ;;  %p1907_p13 = pnand %p1906_p12, %p2074_p4 }
  0x1e   : > { %1742 = vmatpush3.bf16.msra.mxu0 %v2158_v20  ;;  %p1914_p3 = por %p1913_p2, %p1912_p1 }
  0x1f   : > { %1755 = vmatprep.subr.bf16.mxu0 %v1985_v3  ;;  %p1908_p0 = pneg %p1907_p13 }
  0x20   : > { %1724 = vmatpush3.bf16.msra.mxu1 %v2127_v13 }
  0x21   : > { %1725 = vmatprep.subr.bf16.mxu1 %v1985_v3  ;;  %1548 = vmatmul.mubr.msk.f32.vlgmr.msra.gmra.mrb[0].mxu0 %vm427_vm3, %v503_v21  ;;  %p1915_p5 = pnand %p1914_p3, %p1908_p0 }
  0x22   : > { %1757 = vmatpush3.bf16.msra.mxu0 %v2110_v8  ;;  %1585 = vmatprep.mubr.msk.f32.mxu0 %vm1986_vm1, %v1987_v11 }
  0x23   : > { %1758 = vmatprep.subr.bf16.mxu0 %v1985_v3 }
  0x24   : > { %1727 = vmatpush3.bf16.msra.mxu1 %v2142_v17 }
  0x25   : > { %1728 = vmatprep.subr.bf16.mxu1 %v1985_v3 }
  0x26   : > { %1760 = vmatpush3.bf16.msra.mxu0 %v2127_v13 }
  0x27   : > { %1761 = vmatprep.subr.bf16.mxu0 %v1985_v3 }
  0x28   : > { %1730 = vmatpush3.bf16.msra.mxu1 %v2158_v20 }
  0x29   : > { %1743 = vmatprep.subr.bf16.mxu1 %v1985_v3 }
  0x2a   : > { %1763 = vmatpush3.bf16.msra.mxu0 %v2142_v17 }
  0x2b   : > { %1764 = vmatprep.subr.bf16.mxu0 %v1985_v3 }
  0x2e   : > { %1766 = vmatpush3.bf16.msra.mxu0 %v2158_v20 }
  0x2f   : > { %1779 = vmatprep.subr.bf16.mxu0 %v1985_v3 }
  0xee   : > { %v423_v27 = vpop.f32.mrb[0].mxu1 }
  0xef   : > { %428 = vst.msk [vmem:[#allocation3] sm:$0xff] %vm427_vm3, %v423_v27  ;;  %v1511_v28 = vpop.f32.mrb[1].mxu1  ;;  %1529 = vmatmul.mubr.msk.f32.vlgmr.msra.gmra.mrb[2].mxu1 %vm427_vm3, %v423_v27 }
  0xf0   : > { %1745 = vmatpush3.bf16.msra.mxu1 %v2187_v24  ;;  %1566 = vmatprep.mubr.msk.f32.mxu1 %vm1986_vm1, %v1987_v11 }
  0xf1   : > { %1746 = vmatprep.subr.bf16.mxu1 %v1985_v3 }
  0xf4   : > { %1748 = vmatpush3.bf16.msra.mxu1 %v2198_v29  ;;  %v576_v36 = vpop.f32.mrb[0].mxu0 }
  0xf5   : > { %1749 = vmatprep.subr.bf16.mxu1 %v1985_v3  ;;  %v1549_v39 = vpop.f32.mrb[1].mxu0 }
  0xf6   : > { %v504_v35 = vld [vmem:[#allocation3] sm:$0x1]  ;;  %v505_v46 = vld [vmem:[#allocation3 + $0x1] sm:$0x1]  ;;  %v654_v48 = vld [vmem:[#allocation3 + $0x2] sm:$0x1] }
  0xf7   : > { %v577_v37 = vadd.f32 %v576_v36, %v504_v35  ;;  %v655_v56 = vld [vmem:[#allocation3 + $0x3] sm:$0x1]  ;;  %v803_v60 = vld [vmem:[#allocation3 + $0x4] sm:$0x1]  ;;  %v804_v5 = vld [vmem:[#allocation3 + $0x5] sm:$0x1] }
  0xf8   : > { %1751 = vmatpush3.bf16.msra.mxu1 %v2210_v32 }
  0xf9   : > { %1752 = vmatprep.subr.bf16.mxu1 %v1985_v3  ;;  %652 = vst.msk [vmem:[#allocation3] sm:$0x1] %vm330_vm0, %v577_v37 }
  0xfc   : > { %1754 = vmatpush3.bf16.msra.mxu1 %v2220_v38 }
  0xfd   : > { %1767 = vmatprep.subr.bf16.mxu1 %v1985_v3 }
  0xff   : > { %1567 = vmatmul.mubr.msk.f32.vlgmr.msra.gmra.mrb[4].mxu1 %vm427_vm3, %v503_v21 }
 0x100   : > { %1769 = vmatpush3.bf16.msra.mxu1 %v2187_v24  ;;  %1604 = vmatprep.mubr.msk.f32.mxu1 %vm1986_vm1, %v1987_v11 }
 0x101   : > { %1770 = vmatprep.subr.bf16.mxu1 %v1985_v3 }
 0x104   : > { %1772 = vmatpush3.bf16.msra.mxu1 %v2198_v29 }
 0x105   : > { %1773 = vmatprep.subr.bf16.mxu1 %v1985_v3 }
 0x108   : > { %1775 = vmatpush3.bf16.msra.mxu1 %v2210_v32 }
 0x109   : > { %1776 = vmatprep.subr.bf16.mxu1 %v1985_v3 }
 0x10c   : > { %1778 = vmatpush3.bf16.msra.mxu1 %v2220_v38 }
 0x10d   : > { %1791 = vmatprep.subr.bf16.mxu1 %v1985_v3 }
 0x1c2   : > { %v498_v40 = vpop.f32.mrb[2].mxu1 }
 0x1c3   : > { %502 = vst.msk [vmem:[#allocation4] sm:$0xff] %vm427_vm3, %v498_v40  ;;  %v1530_v41 = vpop.f32.mrb[3].mxu1 }
 0x1ca   : > { %v506_v42 = vld [vmem:[#allocation4] sm:$0x1]  ;;  %v656_v50 = vld [vmem:[#allocation4 + $0x2] sm:$0x1]  ;;  %v805_v62 = vld [vmem:[#allocation4 + $0x4] sm:$0x1] }
 0x1cb   : > { %v954_v26 = vld [vmem:[#allocation4 + $0x6] sm:$0x1] }
 0x1d2   : > { %v646_v43 = vpop.f32.mrb[4].mxu1 }
 0x1d3   : > { %v647_v44 = vadd.f32 %v646_v43, %v506_v42  ;;  %v1568_v45 = vpop.f32.mrb[5].mxu1 }
 0x1d5   : > { %v650_v47 = vadd.f32 %v647_v44, %v505_v46 }
 0x1d7   : > { %653 = vst.msk [vmem:[#allocation3 + $0x1] sm:$0x1] %vm330_vm0, %v650_v47  ;;  %1586 = vmatmul.mubr.msk.f32.vlgmr.msra.gmra.mrb[2].mxu0 %vm427_vm3, %v650_v47  ;;  %1605 = vmatmul.mubr.msk.f32.vlgmr.msra.gmra.mrb[6].mxu1 %vm427_vm3, %v650_v47 }
 0x1d8   : > { %1781 = vmatpush3.bf16.msra.mxu0 %v2110_v8  ;;  %1793 = vmatpush3.bf16.msra.mxu1 %v2187_v24 }
 0x1d9   : > { %1782 = vmatprep.subr.bf16.mxu0 %v1985_v3  ;;  %1794 = vmatprep.subr.bf16.mxu1 %v1985_v3 }
 0x1da   : > { %1623 = vmatprep.mubr.msk.f32.mxu0 %vm1986_vm1, %v1987_v11  ;;  %1642 = vmatprep.mubr.msk.f32.mxu1 %vm1986_vm1, %v1987_v11 }
 0x1dc   : > { %1784 = vmatpush3.bf16.msra.mxu0 %v2127_v13  ;;  %1796 = vmatpush3.bf16.msra.mxu1 %v2198_v29 }
 0x1dd   : > { %1785 = vmatprep.subr.bf16.mxu0 %v1985_v3  ;;  %1797 = vmatprep.subr.bf16.mxu1 %v1985_v3 }
 0x1e0   : > { %1787 = vmatpush3.bf16.msra.mxu0 %v2142_v17  ;;  %1799 = vmatpush3.bf16.msra.mxu1 %v2210_v32 }
 0x1e1   : > { %1788 = vmatprep.subr.bf16.mxu0 %v1985_v3  ;;  %1800 = vmatprep.subr.bf16.mxu1 %v1985_v3 }
 0x1e4   : > { %1790 = vmatpush3.bf16.msra.mxu0 %v2158_v20  ;;  %1802 = vmatpush3.bf16.msra.mxu1 %v2220_v38 }
 0x1e5   : > { %1803 = vmatprep.subr.bf16.mxu0 %v1985_v3  ;;  %1815 = vmatprep.subr.bf16.mxu1 %v1985_v3 }
 0x2aa   : > { %v726_v49 = vpop.f32.mrb[2].mxu0  ;;  %v796_v51 = vpop.f32.mrb[6].mxu1 }
 0x2ab   : > { %v727_v52 = vadd.f32 %v726_v49, %v654_v48  ;;  %v797_v53 = vadd.f32 %v796_v51, %v656_v50  ;;  %v1587_v54 = vpop.f32.mrb[3].mxu0  ;;  %v1606_v55 = vpop.f32.mrb[7].mxu1  ;;  %v1396_v51 = vld [vmem:[%s2408_s7] ss:$0 sm:$0xff] }
 0x2ad   : > { %801 = vst.msk [vmem:[#allocation3 + $0x2] sm:$0x1] %vm330_vm0, %v727_v52  ;;  %v800_v57 = vadd.f32 %v797_v53, %v655_v56 }
 0x2af   : > { %802 = vst.msk [vmem:[#allocation3 + $0x3] sm:$0x1] %vm330_vm0, %v800_v57  ;;  %1624 = vmatmul.mubr.msk.f32.vlgmr.msra.gmra.mrb[4].mxu0 %vm427_vm3, %v800_v57  ;;  %1643 = vmatmul.mubr.msk.f32.vlgmr.msra.gmra.mrb[8].mxu1 %vm427_vm3, %v800_v57 }
 0x2b0   : > { %1805 = vmatpush3.bf16.msra.mxu0 %v2110_v8  ;;  %1817 = vmatpush3.bf16.msra.mxu1 %v2187_v24  ;;  %v1113_v8 = vld [vmem:[%s2406_s5 + $0x10] sm:$0xff]  ;;  %v952_v24 = vld [vmem:[#allocation3 + $0x6] sm:$0x1] }
 0x2b1   : > { %1806 = vmatprep.subr.bf16.mxu0 %v1985_v3  ;;  %1818 = vmatprep.subr.bf16.mxu1 %v1985_v3  ;;  %v1831_v10 = vpack.c.bf16 %v1114_v9, %v1113_v8 }
 0x2b2   : > { %1661 = vmatprep.mubr.msk.f32.mxu0 %vm1986_vm1, %v1987_v11  ;;  %1680 = vmatprep.mubr.msk.f32.mxu1 %vm1986_vm1, %v1987_v11 }
 0x2b4   : > { %1808 = vmatpush3.bf16.msra.mxu0 %v2127_v13  ;;  %1820 = vmatpush3.bf16.msra.mxu1 %v2198_v29  ;;  %v1104_v13 = vld [vmem:[%s2405_s4 + $0x8] sm:$0xff] }
 0x2b5   : > { %1809 = vmatprep.subr.bf16.mxu0 %v1985_v3  ;;  %1821 = vmatprep.subr.bf16.mxu1 %v1985_v3  ;;  %v1834_v14 = vpack.c.bf16 %v1104_v13, %v1103_v12 }
 0x2b8   : > { %1811 = vmatpush3.bf16.msra.mxu0 %v2142_v17  ;;  %1823 = vmatpush3.bf16.msra.mxu1 %v2210_v32  ;;  %v1106_v17 = vld [vmem:[%s2405_s4 + $0x18] sm:$0xff]  ;;  %v953_v32 = vld [vmem:[#allocation3 + $0x7] sm:$0x1] }
 0x2b9   : > { %1812 = vmatprep.subr.bf16.mxu0 %v1985_v3  ;;  %1824 = vmatprep.subr.bf16.mxu1 %v1985_v3  ;;  %v1837_v18 = vpack.c.bf16 %v1106_v17, %v1105_v15 }
 0x2bc   : > { %1814 = vmatpush3.bf16.msra.mxu0 %v2158_v20  ;;  %1826 = vmatpush3.bf16.msra.mxu1 %v2220_v38  ;;  %v1109_v20 = vld [vmem:[%s2405_s4 + $0x30] sm:$0xff] }
 0x2bd   : > { %1827 = vmatprep.subr.bf16.mxu0 %v1985_v3  ;;  %v1843_v23 = vpack.c.bf16 %v1110_v22, %v1109_v20 }
 0x382   : > { %v875_v61 = vpop.f32.mrb[4].mxu0  ;;  %v945_v63 = vpop.f32.mrb[8].mxu1 }
 0x383   : > { %v876_v0 = vadd.f32 %v875_v61, %v803_v60  ;;  %v946_v1 = vadd.f32 %v945_v63, %v805_v62  ;;  %v1625_v2 = vpop.f32.mrb[5].mxu0  ;;  %v1644_v4 = vpop.f32.mrb[9].mxu1 }
 0x385   : > { %950 = vst.msk [vmem:[#allocation3 + $0x4] sm:$0x1] %vm330_vm0, %v876_v0  ;;  %v949_v7 = vadd.f32 %v946_v1, %v804_v5 }
 0x387   : > { %951 = vst.msk [vmem:[#allocation3 + $0x5] sm:$0x1] %vm330_vm0, %v949_v7  ;;  %1662 = vmatmul.mubr.msk.f32.vlgmr.msra.gmra.mrb[6].mxu0 %vm427_vm3, %v949_v7  ;;  %1681 = vmatmul.mubr.msk.f32.vlgmr.msra.gmra.mrb[10].mxu1 %vm427_vm3, %v949_v7 }
 0x388   : > { %1829 = vmatpush3.bf16.msra.mxu0 %v1828_v6  ;;  %1691 = vmatprep.mubr.msk.f32.mxu0 %vm1986_vm1, %v1987_v11 }
 0x389   : > { %1830 = vmatprep.subr.bf16.mxu0 %v1985_v3 }
 0x38c   : > { %1832 = vmatpush3.bf16.msra.mxu0 %v1831_v10 }
 0x38d   : > { %1833 = vmatprep.subr.bf16.mxu0 %v1985_v3 }
 0x38f   : > { %1692 = vmatmul.mubr.msk.f32.vlgmr.msra.gmra.mrb[8].mxu0 %vm353_vm2, %v2139_v16 }
 0x390   : > { %1835 = vmatpush3.bf16.msra.mxu0 %v1834_v14  ;;  %1710 = vmatprep.mubr.msk.f32.mxu0 %vm1986_vm1, %v1987_v11  ;;  %v1108_v11 = vld [vmem:[%s2405_s4 + $0x28] sm:$0xff] }
 0x391   : > { %1836 = vmatprep.subr.bf16.mxu0 %v1985_v3  ;;  %v1840_v21 = vpack.c.bf16 %v1108_v11, %v1107_v19 }
 0x394   : > { %1838 = vmatpush3.bf16.msra.mxu0 %v1837_v18 }
 0x395   : > { %1839 = vmatprep.subr.bf16.mxu0 %v1985_v3 }
 0x398   : > { %1841 = vmatpush3.bf16.msra.mxu0 %v1840_v21 }
 0x399   : > { %1842 = vmatprep.subr.bf16.mxu0 %v1985_v3 }
 0x39c   : > { %1844 = vmatpush3.bf16.msra.mxu0 %v1843_v23 }
 0x45a   : > { %v1024_v25 = vpop.f32.mrb[6].mxu0  ;;  %v1094_v27 = vpop.f32.mrb[10].mxu1 }
 0x45b   : > { %v1025_v28 = vadd.f32 %v1024_v25, %v952_v24  ;;  %v1095_v29 = vadd.f32 %v1094_v27, %v954_v26  ;;  %v1663_v30 = vpop.f32.mrb[7].mxu0  ;;  %v1682_v31 = vpop.f32.mrb[11].mxu1 }
 0x45d   : > { %1099 = vst.msk [vmem:[#allocation3 + $0x6] sm:$0x1] %vm330_vm0, %v1025_v28  ;;  %v1098_v33 = vadd.f32 %v1095_v29, %v953_v32 }
 0x45f   : > { %1100 = vst.msk [vmem:[#allocation3 + $0x7] sm:$0x1] %vm330_vm0, %v1098_v33  ;;  %1101 = vst.msk [vmem:[#allocation2] sm:$0x1] %vm330_vm0, %v1098_v33 }
 0x462   : > { %v1181_v34 = vpop.f32.mrb[8].mxu0 }
 0x463   : > { %v1693_v35 = vpop.f32.mrb[9].mxu0 }
 0x466   : > { %v1102_v3 = vld [vmem:[#allocation3] sm:$0xff] }
 0x467   : > { %1711 = vmatmul.mubr.msk.f32.vlgmr.msra.gmra.mrb[10].mxu0 %vm427_vm3, %v1102_v3 }
 0x53a   : > { %v1254_v36 = vpop.f32.mrb[10].mxu0 }
 0x53b   : > { %v1255_v37 = vadd.f32 %v1254_v36, %v1181_v34  ;;  %v1712_v38 = vpop.f32.mrb[11].mxu0 }
 0x53d   : > { %v1258_v39 = vadd.f32 %v1255_v37, %v2139_v16  ;;  %v1395_v16 = vld [vmem:[%s2407_s6] ss:$0 sm:$0xff] }
 0x53f   : > { %v1259_v40 = vsel %vm353_vm2, %v1258_v39, 0.0 }
 0x540   : > { %1260 = vadd.xlane.f32.xlu0 %v1259_v40 }
 0x5cd   : > { %v1261_v41 = vpop.xlane.xlu0 %1260 }
 0x5ce   : > { %v1263_v42 = vmul.f32 0.03125, %v1261_v41 }
 0x5d0   : > { %v1264_v43 = vsub.f32 %v1258_v39, %v1263_v42 }
 0x5d2   : > { %v1265_v44 = vmul.f32 %v1264_v43, %v1264_v43 }
 0x5d4   : > { %v1266_v45 = vsel %vm353_vm2, %v1265_v44, 0.0 }
 0x5d5   : > { %1267 = vadd.xlane.f32.xlu0 %v1266_v45 }
 0x662   : > { %v1268_v46 = vpop.xlane.xlu0 %1267 }
 0x663   : > { %v1269_v47 = vmul.f32 0.03125, %v1268_v46 }
 0x665   : > { %v1270_v48 = vadd.f32 1e-05, %v1269_v47 }
 0x667   : > { %1903 = vrsqrt.f32 %v1270_v48 }
 0x671   : > { %v1904_v49 = vpop.eup %1903 }
 0x672   : > { %v1272_v50 = vmul.f32 %v1904_v49, %v1264_v43 }
 0x674   : > { %v1280_v52 = vmul.f32 %v1395_v16, %v1272_v50 }
 0x676   : > { %v1288_v53 = vadd.f32 %v1396_v51, %v1280_v52 }
 0x678   : > { %1289 = vst.msk [vmem:[%s318_s23] sm:$0xff] %vm353_vm2, %v1288_v53 }
 0x679   : > { %1918 = shalt.err (!%p1915_p5)
}
 0x67a   : > { %s1919_s12 = scalar_lea.hbm %s2353_s11, 128  ;;  %s1923_s23 = scalar_lea.hbm %s2409_s8, 256 }
 0x67b   : > { %p1920_p6 = scmp.ne.s32.totalorder %s2353_s11, %s1919_s12  ;;  %p1924_p10 = scmp.lt.u32.totalorder %s2353_s11, %s2409_s8 }
 0x67c   : > { %p1925_p11 = scmp.lt.u32.totalorder %s1923_s23, %s1919_s12  ;;  %p1927_p13 = scmp.lt.u32.totalorder %s1919_s12, %s2353_s11 }
 0x67d   : > { %p1921_p7 = pnand %p1920_p6, %p2074_p4 }
 0x67e   : > { %p1926_p12 = por %p1925_p11, %p1924_p10 }
 0x67f   : > { %p1922_p9 = pneg %p1921_p7 }
 0x680   : > { %p1928_p0 = por %p1927_p13, %p1926_p12 }
 0x682   : > { %p1929_p1 = pnand %p1928_p0, %p1922_p9 }
 0x684   : > { %1932 = shalt.err (!%p1929_p1)
}
 0x685   : > { %1845 = dma.vmem_to_hbm [thread:$0]  (%p2074_p4), %s2355_s24, 128, %s2353_s11, %s1291_s16  }
 0x686 PF: > { %p1851_p2 = scmp.ge.s32.totalorder %s1983_s10, 2  ;;  %s1317_s19 = sand.u32 1, %s1963_s27  }
 0x687   : > { %s1318_s30 = scalar_lea.sflag [#allocation6], %s1317_s19 }
 0x688   : > { %p1848_p3 = pnand %p1851_p2, %p2081_p8 }
 0x68a   : > { %1958 = dma.done.wait (!%p1848_p3), %s1318_s30, 128  }
 0x68b   : > { %1960 = vsyncadd (!%p1848_p3), %s1318_s30, 4294967168  ;;  %s21_s10 = sadd.s32 1, %s1983_s10   ;;  %s2412_s27 = smov %s1967_s28 }
 0x68c   : > { %p18_p5 = scmp.ge.s32.totalorder %s21_s10, 4   ;;  %s2413_s28 = smov %s1971_s29 }
 0x68d   : > { %s2414_s29 = smov %s2087_s18  ;;  %s2415_s30 = smov %s1979_s9 }
 0x68e   : > { %s2416_s9 = smov %s2418_s13  ;;  %20 = sbr.rel (!%p18_p5) target bundleno = 4 (0x4), region = 91 }
 0x695   :  { %1323 = vsyncpa [#allocation6], 1 }
 0x696   :  { %1325 = vsyncpa [#allocation6 + $0x1], 1 }

</bundles_post_ra>
